<compile_context>
chip_gen: v7x
topology: tpu7x:2x2x1
jax: 0.10.0
libtpu: 0.0.40
codegen_flags: <defaults>
</compile_context>

<pallas_src>
import functools
import math

import jax
import jax.numpy as jnp
from jax import lax
from jax.experimental import pallas as pl
from jax.experimental.pallas import tpu as pltpu

_LANES = 128            # vreg lane width; softmax stats are lane-replicated
_NEG_INF = -1e30        # large finite "minus infinity" (avoids inf-inf NaNs)
_LOG2E = math.log2(math.e)


def _round_up(x, m):
    return ((x + m - 1) // m) * m


def _bcast_cols(x, n):
    """x is (rows, _LANES) lane-replicated; return a value broadcastable
    against n columns (lane-dense when n == _LANES, else a (rows, 1) slice)."""
    return x if n == _LANES else x[:, :1]


def _vmem_cap_bytes():
    try:
        cap = getattr(pltpu.get_tpu_info(), "vmem_capacity_bytes", None)
        if cap:
            return int(cap)
    except Exception:
        pass
    return 64 << 20      # conservative (v7x-sized) fallback


def _flash_attn_kernel(q_ref, v_ref, o_ref, m_sc, l_sc, acc_sc, *,
                       kv_len, block_k):
    """One (batch, q-tile) accumulation step over one k-tile.

    q_ref:  (tq, Dp)   query tile, pre-scaled by log2(e) in the wrapper
    v_ref:  (tk, Dp)   key/value tile (same tensor plays both roles)
    o_ref:  (tq, Dp)   output tile (written only on the last k step)
    m_sc:   (tq, 128)  running row max (lane-replicated, f32 scratch)
    l_sc:   (tq, 128)  running softmax denominator (lane-replicated, f32)
    acc_sc: (tq, Dp)   running un-normalized context (f32 scratch)
    """
    k_step = pl.program_id(2)
    num_k = pl.num_programs(2)

    @pl.when(k_step == 0)
    def _():
        m_sc[...] = jnp.full_like(m_sc, _NEG_INF)
        l_sc[...] = jnp.zeros_like(l_sc)
        acc_sc[...] = jnp.zeros_like(acc_sc)

    q = q_ref[...]                       # (tq, Dp)
    v = v_ref[...]                       # (tk, Dp)

    # scores = q @ v^T without an explicit transpose: contract the D axes.
    s = lax.dot_general(q, v,
                        dimension_numbers=(((1,), (1,)), ((), ())),
                        preferred_element_type=jnp.float32)      # (tq, tk)

    # Mask zero-padded key columns. Only emitted when padding exists, and only
    # executed on the last k step (lax.cond), so non-final steps pay nothing.
    if kv_len % block_k != 0:
        def _mask(scores):
            k_ids = k_step * block_k + lax.broadcasted_iota(
                jnp.int32, scores.shape, 1)
            return jnp.where(k_ids < kv_len, scores, _NEG_INF)

        s = lax.cond(k_step == num_k - 1, _mask, lambda x: x, s)

    m_prev = m_sc[...]                                        # (tq, 128)
    m_next = jnp.maximum(m_prev, jnp.max(s, axis=-1, keepdims=True))
    # q was pre-scaled by log2(e), so exp2 here == exp on the original scores.
    alpha = jnp.exp2(m_prev - m_next)                         # (tq, 128)
    p = jnp.exp2(s - _bcast_cols(m_next, s.shape[-1]))        # (tq, tk)

    l_sc[...] = alpha * l_sc[...] + jnp.sum(p, axis=-1, keepdims=True)
    acc_sc[...] = (_bcast_cols(alpha, acc_sc.shape[-1]) * acc_sc[...] +
                   jnp.dot(p.astype(v.dtype), v,
                           preferred_element_type=jnp.float32))
    m_sc[...] = m_next

    # Deferred normalization: scale the (tq, Dp) result once at the end.
    # Exact divide (NOT approx reciprocal) for parity with the reference.
    @pl.when(k_step == num_k - 1)
    def _():
        inv_l = 1.0 / l_sc[...]
        o_ref[...] = (acc_sc[...] *
                      _bcast_cols(inv_l, acc_sc.shape[-1])).astype(o_ref.dtype)


def attention(query, values, *, block_q=512, block_k=1024,
              use_bf16_matmul=False):
    """query: [B, Lq, D], values: [B, Lk, D] -> context: [B, Lq, D].

    Matches the PyTorch module:  softmax(query @ values^T, -1) @ values
    (no 1/sqrt(D) scaling; `values` plays both key and value roles).

    use_bf16_matmul: cast f32 inputs to bf16 for the two MXU matmuls (native
    MXU dtype, ~3-4x faster, f32 accumulation kept). Off by default to keep
    numerical parity with the f32 reference.
    """
    B, Lq, D = query.shape
    Bv, Lk, Dv = values.shape
    assert B == Bv and D == Dv

    # ---- tile sizes ---------------------------------------------------------
    tq = _round_up(min(block_q, Lq), 8)
    tk = _round_up(min(block_k, Lk), 8)
    # v7x megacore: keep >= 2 parallel (batch, q-tile) units when possible.
    if B * pl.cdiv(Lq, tq) < 2 and tq > 8:
        half = _round_up(pl.cdiv(Lq, 2), 8)
        if Lq >= 256:
            half = max(half, 128)        # keep MXU-friendly q tiles
        tq = min(tq, max(half, 8))

    # ---- padding ------------------------------------------------------------
    Dp = _round_up(D, 128)               # lane-dense stores / full MXU N
    Lq_p = _round_up(Lq, tq)
    Lk_p = _round_up(Lk, tk)

    orig_dtype = query.dtype
    # exp(x) == exp2(x * log2 e): fold the base change into the q prep (fuses
    # with the padding copy), removing one VPU mul per score element per step.
    q = query * jnp.asarray(_LOG2E, dtype=query.dtype)
    v = values
    if use_bf16_matmul and jnp.dtype(orig_dtype) == jnp.float32:
        q = q.astype(jnp.bfloat16)
        v = v.astype(jnp.bfloat16)
    if (Dp != D) or (Lq_p != Lq):
        q = jnp.pad(q, ((0, 0), (0, Lq_p - Lq), (0, Dp - D)))
    if (Dp != D) or (Lk_p != Lk):
        v = jnp.pad(v, ((0, 0), (0, Lk_p - Lk), (0, Dp - D)))

    grid = (B, Lq_p // tq, Lk_p // tk)
    kernel = functools.partial(_flash_attn_kernel, kv_len=Lk, block_k=tk)

    # ---- scoped-VMEM budget (per-generation cap, 75% of physical) -----------
    in_itemsize = jnp.dtype(q.dtype).itemsize
    out_itemsize = jnp.dtype(orig_dtype).itemsize
    pipeline_bytes = (2 * (tq * Dp + tk * Dp) * in_itemsize +
                      2 * tq * Dp * out_itemsize)           # double-buffered q,v,o
    scratch_bytes = (2 * tq * _LANES + tq * Dp) * 4
    needed = pipeline_bytes + scratch_bytes
    cap = _vmem_cap_bytes()
    vmem_limit = int(min(max(4 * needed, 32 << 20), (cap * 3) // 4))

    out = pl.pallas_call(
        kernel,
        out_shape=jax.ShapeDtypeStruct((B, Lq_p, Dp), orig_dtype),
        grid_spec=pltpu.PrefetchScalarGridSpec(
            num_scalar_prefetch=0,
            grid=grid,
            in_specs=[
                pl.BlockSpec((pl.Squeezed(), tq, Dp), lambda b, i, k: (b, i, 0)),
                pl.BlockSpec((pl.Squeezed(), tk, Dp), lambda b, i, k: (b, k, 0)),
            ],
            out_specs=pl.BlockSpec((pl.Squeezed(), tq, Dp),
                                   lambda b, i, k: (b, i, 0)),
            scratch_shapes=[
                pltpu.VMEM((tq, _LANES), jnp.float32),  # running max
                pltpu.VMEM((tq, _LANES), jnp.float32),  # running denominator
                pltpu.VMEM((tq, Dp), jnp.float32),      # un-normalized context
            ],
        ),
        compiler_params=pltpu.CompilerParams(
            dimension_semantics=("parallel", "parallel", "arbitrary"),
            vmem_limit_bytes=vmem_limit,
        ),
    )(q, v)

    if (Dp != D) or (Lq_p != Lq):
        out = out[:, :Lq, :D]
    return out


def _reference(query, values):
    scores = jnp.matmul(query, jnp.swapaxes(values, -2, -1))
    weights = jax.nn.softmax(scores, axis=-1)
    return jnp.matmul(weights, values)


if __name__ == "__main__":
    key = jax.random.PRNGKey(0)
    k1, k2, k3, k4 = jax.random.split(key, 4)

    # Note: matching the PyTorch module, there is no 1/sqrt(D) scaling and
    # `values` serves as both keys and values.
    B, Lq, Lk, D = 2, 8, 8, 32
    query = jax.random.normal(k1, (B, Lq, D), dtype=jnp.float32)
    values = jax.random.normal(k2, (B, Lk, D), dtype=jnp.float32)

    out = attention(query, values)
    jax.block_until_ready(out)
    ref = _reference(query, values)
    assert out.shape == (B, Lq, D)
    assert jnp.allclose(out, ref, atol=2e-3, rtol=2e-3), "mismatch (test 1)"

    # Second shape: exercises multiple k tiles, padded-key masking, and the
    # multi-step online-softmax accumulation path.
    B2, Lq2, Lk2, D2 = 1, 48, 40, 16
    q2 = jax.random.normal(k3, (B2, Lq2, D2), dtype=jnp.float32)
    v2 = jax.random.normal(k4, (B2, Lk2, D2), dtype=jnp.float32)
    out2 = attention(q2, v2, block_q=16, block_k=16)
    jax.block_until_ready(out2)
    ref2 = _reference(q2, v2)
    assert out2.shape == (B2, Lq2, D2)
    assert jnp.allclose(out2, ref2, atol=2e-3, rtol=2e-3), "mismatch (test 2)"

    print("KERNEL_OK")
</pallas_src>

<mosaic_0001>
module attributes {stable_mosaic.version = 11 : i64} {
  func.func @_flash_attn_kernel(%arg0: i32, %arg1: i32, %arg2: i32, %arg3: memref<1x8x128xf32, #tpu.memory_space<vmem>>, %arg4: memref<1x8x128xf32, #tpu.memory_space<vmem>>, %arg5: memref<1x8x128xf32, #tpu.memory_space<vmem>>, %arg6: memref<8x128xf32, #tpu.memory_space<vmem>>, %arg7: memref<8x128xf32, #tpu.memory_space<vmem>>, %arg8: memref<8x128xf32, #tpu.memory_space<vmem>>) attributes {dimension_semantics = [#tpu.dimension_semantics<parallel>, #tpu.dimension_semantics<parallel>, #tpu.dimension_semantics<arbitrary>], iteration_bounds = array<i64: 2, 1, 1>, scalar_prefetch = 0 : i64, scratch_operands = 3 : i64, tpu.core_type = #tpu.core_type<tc>, window_params = [{transform_indices = @transform_0, window_bounds = array<i64: 1, 8, 128>}, {transform_indices = @transform_1, window_bounds = array<i64: 1, 8, 128>}, {transform_indices = @transform_2, window_bounds = array<i64: 1, 8, 128>}]} {
    %c0_i32 = arith.constant 0 : i32
    %0 = arith.cmpi eq, %arg2, %c0_i32 : i32
    %1 = arith.extui %0 : i1 to i32
    %c0_i32_0 = arith.constant 0 : i32
    %2 = arith.cmpi ne, %1, %c0_i32_0 : i32
    scf.if %2 {
      %cst_23 = arith.constant -1.000000e+30 : f32
      %35 = vector.broadcast %cst_23 : f32 to vector<8x128xf32>
      %c0_24 = arith.constant 0 : index
      %c0_25 = arith.constant 0 : index
      %36 = vector.load %arg6[%c0_24, %c0_25] : memref<8x128xf32, #tpu.memory_space<vmem>>, vector<8x128xf32>
      tpu.vector_store %arg6[%c0_24, %c0_25], %35 {strides = array<i32>} : memref<8x128xf32, #tpu.memory_space<vmem>>, vector<8x128xf32>,
      %cst_26 = arith.constant 0.000000e+00 : f32
      %37 = vector.broadcast %cst_26 : f32 to vector<8x128xf32>
      %c0_27 = arith.constant 0 : index
      %c0_28 = arith.constant 0 : index
      %38 = vector.load %arg7[%c0_27, %c0_28] : memref<8x128xf32, #tpu.memory_space<vmem>>, vector<8x128xf32>
      tpu.vector_store %arg7[%c0_27, %c0_28], %37 {strides = array<i32>} : memref<8x128xf32, #tpu.memory_space<vmem>>, vector<8x128xf32>,
      %cst_29 = arith.constant 0.000000e+00 : f32
      %39 = vector.broadcast %cst_29 : f32 to vector<8x128xf32>
      %c0_30 = arith.constant 0 : index
      %c0_31 = arith.constant 0 : index
      %40 = vector.load %arg8[%c0_30, %c0_31] : memref<8x128xf32, #tpu.memory_space<vmem>>, vector<8x128xf32>
      tpu.vector_store %arg8[%c0_30, %c0_31], %39 {strides = array<i32>} : memref<8x128xf32, #tpu.memory_space<vmem>>, vector<8x128xf32>,
    } else {
    }
    %c0 = arith.constant 0 : index
    %c0_1 = arith.constant 0 : index
    %c0_2 = arith.constant 0 : index
    %3 = vector.load %arg3[%c0, %c0_1, %c0_2] : memref<1x8x128xf32, #tpu.memory_space<vmem>>, vector<1x8x128xf32>
    %4 = vector.shape_cast %3 : vector<1x8x128xf32> to vector<8x128xf32>
    %c0_3 = arith.constant 0 : index
    %c0_4 = arith.constant 0 : index
    %c0_5 = arith.constant 0 : index
    %5 = vector.load %arg4[%c0_3, %c0_4, %c0_5] : memref<1x8x128xf32, #tpu.memory_space<vmem>>, vector<1x8x128xf32>
    %6 = vector.shape_cast %5 : vector<1x8x128xf32> to vector<8x128xf32>
    %cst = arith.constant dense<0.000000e+00> : vector<8x8xf32>
    %7 = tpu.matmul %4, %6, %cst {dimension_numbers = #tpu.dot_dimension_numbers<[1], [1], [0], [0], [0, 0, 1, 0], [], []>} : vector<8x128xf32>, vector<8x128xf32>, vector<8x8xf32> -> vector<8x8xf32>
    %c0_6 = arith.constant 0 : index
    %c0_7 = arith.constant 0 : index
    %8 = vector.load %arg6[%c0_6, %c0_7] : memref<8x128xf32, #tpu.memory_space<vmem>>, vector<8x128xf32>
    %cst_8 = arith.constant dense<0xFF800000> : vector<8xf32>
    %9 = vector.multi_reduction <maximumf>, %7, %cst_8 [1] : vector<8x8xf32> to vector<8xf32>
    %10 = vector.shape_cast %9 : vector<8xf32> to vector<8x1xf32>
    %11 = vector.broadcast %10 : vector<8x1xf32> to vector<8x128xf32>
    %12 = arith.maximumf %8, %11 : vector<8x128xf32>
    %13 = arith.subf %8, %12 : vector<8x128xf32>
    %14 = math.exp2 %13 : vector<8x128xf32>
    %15 = vector.extract_strided_slice %12 {offsets = [0, 0], sizes = [8, 1], strides = [1, 1]} : vector<8x128xf32> to vector<8x1xf32>
    %16 = vector.broadcast %15 : vector<8x1xf32> to vector<8x8xf32>
    %17 = arith.subf %7, %16 : vector<8x8xf32>
    %18 = math.exp2 %17 : vector<8x8xf32>
    %c0_9 = arith.constant 0 : index
    %c0_10 = arith.constant 0 : index
    %19 = vector.load %arg7[%c0_9, %c0_10] : memref<8x128xf32, #tpu.memory_space<vmem>>, vector<8x128xf32>
    %20 = arith.mulf %14, %19 : vector<8x128xf32>
    %cst_11 = arith.constant dense<0.000000e+00> : vector<8xf32>
    %21 = vector.multi_reduction <add>, %18, %cst_11 [1] : vector<8x8xf32> to vector<8xf32>
    %22 = vector.shape_cast %21 : vector<8xf32> to vector<8x1xf32>
    %23 = vector.broadcast %22 : vector<8x1xf32> to vector<8x128xf32>
    %24 = arith.addf %20, %23 : vector<8x128xf32>
    %c0_12 = arith.constant 0 : index
    %c0_13 = arith.constant 0 : index
    %25 = vector.load %arg7[%c0_12, %c0_13] : memref<8x128xf32, #tpu.memory_space<vmem>>, vector<8x128xf32>
    tpu.vector_store %arg7[%c0_12, %c0_13], %24 {strides = array<i32>} : memref<8x128xf32, #tpu.memory_space<vmem>>, vector<8x128xf32>,
    %c0_14 = arith.constant 0 : index
    %c0_15 = arith.constant 0 : index
    %26 = vector.load %arg8[%c0_14, %c0_15] : memref<8x128xf32, #tpu.memory_space<vmem>>, vector<8x128xf32>
    %27 = arith.mulf %14, %26 : vector<8x128xf32>
    %cst_16 = arith.constant dense<0.000000e+00> : vector<8x128xf32>
    %28 = tpu.matmul %18, %6, %cst_16 {dimension_numbers = #tpu.dot_dimension_numbers<[1], [0], [0], [1], [0, 0, 1, 1], [], []>} : vector<8x8xf32>, vector<8x128xf32>, vector<8x128xf32> -> vector<8x128xf32>
    %29 = arith.addf %27, %28 : vector<8x128xf32>
    %c0_17 = arith.constant 0 : index
    %c0_18 = arith.constant 0 : index
    %30 = vector.load %arg8[%c0_17, %c0_18] : memref<8x128xf32, #tpu.memory_space<vmem>>, vector<8x128xf32>
    tpu.vector_store %arg8[%c0_17, %c0_18], %29 {strides = array<i32>} : memref<8x128xf32, #tpu.memory_space<vmem>>, vector<8x128xf32>,
    %c0_19 = arith.constant 0 : index
    %c0_20 = arith.constant 0 : index
    %31 = vector.load %arg6[%c0_19, %c0_20] : memref<8x128xf32, #tpu.memory_space<vmem>>, vector<8x128xf32>
    tpu.vector_store %arg6[%c0_19, %c0_20], %12 {strides = array<i32>} : memref<8x128xf32, #tpu.memory_space<vmem>>, vector<8x128xf32>,
    %c0_i32_21 = arith.constant 0 : i32
    %32 = arith.cmpi eq, %arg2, %c0_i32_21 : i32
    %33 = arith.extui %32 : i1 to i32
    %c0_i32_22 = arith.constant 0 : i32
    %34 = arith.cmpi ne, %33, %c0_i32_22 : i32
    scf.if %34 {
      %c0_23 = arith.constant 0 : index
      %c0_24 = arith.constant 0 : index
      %35 = vector.load %arg7[%c0_23, %c0_24] : memref<8x128xf32, #tpu.memory_space<vmem>>, vector<8x128xf32>
      %cst_25 = arith.constant 1.000000e+00 : f32
      %36 = vector.broadcast %cst_25 : f32 to vector<8x128xf32>
      %37 = arith.divf %36, %35 : vector<8x128xf32>
      %c0_26 = arith.constant 0 : index
      %c0_27 = arith.constant 0 : index
      %38 = vector.load %arg8[%c0_26, %c0_27] : memref<8x128xf32, #tpu.memory_space<vmem>>, vector<8x128xf32>
      %39 = arith.mulf %38, %37 : vector<8x128xf32>
      %c0_28 = arith.constant 0 : index
      %c0_29 = arith.constant 0 : index
      %c0_30 = arith.constant 0 : index
      %40 = vector.load %arg5[%c0_28, %c0_29, %c0_30] : memref<1x8x128xf32, #tpu.memory_space<vmem>>, vector<1x8x128xf32>
      %41 = vector.shape_cast %40 : vector<1x8x128xf32> to vector<8x128xf32>
      %42 = vector.shape_cast %39 : vector<8x128xf32> to vector<1x8x128xf32>
      tpu.vector_store %arg5[%c0_28, %c0_29, %c0_30], %42 {strides = array<i32>} : memref<1x8x128xf32, #tpu.memory_space<vmem>>, vector<1x8x128xf32>,
    } else {
    }
    return
  }
  func.func @transform_0(%arg0: i32, %arg1: i32, %arg2: i32) -> (i32, i32, i32) {
    %c0_i32 = arith.constant 0 : i32
    %c0_i32_0 = arith.constant 0 : i32
    return %arg0, %arg1, %c0_i32 : i32, i32, i32
  }
  func.func @transform_1(%arg0: i32, %arg1: i32, %arg2: i32) -> (i32, i32, i32) {
    %c0_i32 = arith.constant 0 : i32
    %c0_i32_0 = arith.constant 0 : i32
    return %arg0, %arg2, %c0_i32 : i32, i32, i32
  }
  func.func @transform_2(%arg0: i32, %arg1: i32, %arg2: i32) -> (i32, i32, i32) {
    %c0_i32 = arith.constant 0 : i32
    %c0_i32_0 = arith.constant 0 : i32
    return %arg0, %arg1, %c0_i32 : i32, i32, i32
  }
}

</mosaic_0001>

<bundles_post_ra>
// kernel: tpu_custom_call.1
= control target key start
LH: loop header
LB: loop body
LE: loop exit
PB: predicated region body
PF: predicated region fallthrough
CT: control target
= control target key end

     0   :  { %7 = vsyncpa [#allocation6], 0  ;;  %s1035_s0 = inlined_call_operand.hbm [shape: f32[2,8,128], index: 0, kind: input, shape index: {}]   ;;  %s1036_s1 = inlined_call_operand.hbm [shape: f32[2,8,128], index: 1, kind: input, shape index: {}]   ;;  %s1037_s2 = inlined_call_operand.hbm [shape: f32[2,8,128], index: 2, kind: output, shape index: {}]  }
   0x1   :  { %9 = vsyncpa [#allocation6 + $0x1], 0 }
   0x2   :  { %10 = vsyncpa [#allocation9], 0 }
   0x3   :  { %12 = vsyncpa [#allocation9 + $0x1], 0 }
   0x4   :  { %13 = vsyncpa [#allocation7], 0 }
   0x5   :  { %15 = vsyncpa [#allocation7 + $0x1], 0  ;;  %s810_s9 = smov 0   ;;  %s812_s10 = smov 0  }
   0x6   :  { %s814_s11 = smov 0   ;;  %s816_s12 = smov 0  }
   0x7   :  { %s818_s13 = smov 0   ;;  %s820_s14 = smov 0  }
   0x8 LB: > { %s533_s15 = sadd.s32 4294967295, %s787_s14   ;;  %s534_s16 = sadd.s32 4294967294, %s787_s14   ;;  %s787_s14 = sphi %s820_s14, %s21_s14   ;;  %s783_s13 = sphi %s818_s13, %s1057_s13   ;;  %s779_s12 = sphi %s816_s12, %s1056_s12   ;;  %s775_s11 = sphi %s814_s11, %s1055_s11   ;;  %s771_s10 = sphi %s812_s10, %s1054_s10   ;;  %s767_s9 = sphi %s810_s9, %s1053_s9  }
   0x9   : > { %s40_s17 = sadd.s32 1, %s783_s13  ;;  %s49_s18 = sadd.s32 1, %s775_s11 }
   0xa   : > { %p42_p0 = scmp.ge.s32.totalorder %s40_s17, 2  ;;  %p56_p1 = scmp.ne.s32.totalorder %s775_s11, %s771_s10 }
   0xb   : > { %p57_p2 = scmp.eq.s32.totalorder %s787_s14, 0  ;;  %p62_p3 = scmp.ne.s32.totalorder %s771_s10, %s767_s9 }
   0xc   : > { %s1059_s17 = smov (%p42_p0, %s40_s17), 0  ;;  %p63_p5 = scmp.eq.s32.totalorder %s533_s15, 0 }
   0xd   : > { %p851_p4 = por %p57_p2, %p56_p1  ;;  %s44_s20 = ssub.s32 %s783_s13, %s1059_s17 }
   0xe   : > { %p116_p6 = scmp.eq.s32.totalorder %s533_s15, 1  ;;  %p47_p7 = scmp.eq.s32.totalorder %s44_s20, 0 }
   0xf   : > { %p857_p8 = por %p63_p5, %p62_p3  ;;  %p122_p10 = scmp.eq.s32.totalorder %s534_s16, 1 }
  0x10   : > { %p861_p9 = por %p116_p6, %p56_p1  ;;  %p581_p13 = scmp.lt.s32.totalorder %s787_s14, 2 }
  0x11   : > { %s1041_s21 = scalar_select %p857_p8, 1, 0 }
  0x12   : > { %s1042_s22 = scalar_select %p861_p9, 1, 0 }
  0x13   : > { %s866_s23 = scalar_select %p47_p7, %s775_s11, %s49_s18  }
  0x14   : > { %p868_p11 = por %p122_p10, %p62_p3  ;;  %s875_s25 = sand.u32 1, %s775_s11  }
  0x15   : > { %s537_s26 = sshll.u32 %s875_s25, 3  ;;  %s538_s27 = sshll.u32 %s783_s13, 7 }
  0x16   : > { %s1043_s24 = scalar_select %p868_p11, 1, 0 }
  0x17   : > { %s884_s30 = scalar_lea.hbm %s1035_s0, %s538_s27  ;;  %s146_s3 = scalar_lea.vmem [#allocation5], %s537_s26 }
  0x18   : > { %s154_s4 = sshll.u32 %s146_s3, 4  ;;  %p892_p0 = pnand %p581_p13, %p851_p4  ;;  %s888_s4 = int_to_ptr.vmem [resolvable:$true] %s154_s4 }
  0x19   : > { %s143_s6 = scalar_lea.sflag [#allocation6], %s875_s25  ;;  %s641_s7 = scalar_lea.hbm %s884_s30, 128 }
  0x1a   : > { %p642_p3 = scmp.ne.s32.totalorder %s884_s30, %s641_s7  ;;  %p643_p5 = pneg %p892_p0 }
  0x1b   : > { %s646_s16 = scalar_lea.hbm %s1035_s0, 256  ;;  %p647_p4 = scmp.lt.u32.totalorder %s884_s30, %s1035_s0 }
  0x1c   : > { %p644_p6 = pnand %p643_p5, %p642_p3  ;;  %p648_p10 = scmp.lt.u32.totalorder %s646_s16, %s641_s7 }
  0x1d   : > { %p650_p12 = scmp.lt.u32.totalorder %s641_s7, %s884_s30 }
  0x1e   : > { %p645_p7 = pneg %p644_p6  ;;  %p649_p13 = por %p648_p10, %p647_p4 }
  0x20   : > { %p651_p1 = por %p650_p12, %p649_p13 }
  0x22   : > { %p652_p2 = pnand %p651_p1, %p645_p7 }
  0x24   : > { %655 = shalt.err (!%p652_p2)
}
  0x25   : > { %s656_s20 = scalar_lea.vmem %s888_s4, 128  ;;  %s789_s28 = smov [#allocation5]  }
  0x26   : > { %p657_p3 = scmp.ne.s32.totalorder %s888_s4, %s656_s20  ;;  %s661_s29 = sshll.u32 %s789_s28, 4  ;;  %s662_s29 = int_to_ptr.vmem [resolvable:$false] %s661_s29 }
  0x27   : > { %s663_s3 = scalar_lea.vmem %s662_s29, 256  ;;  %p664_p9 = scmp.lt.s32.totalorder %s888_s4, %s662_s29 }
  0x28   : > { %p659_p6 = pnand %p657_p3, %p643_p5  ;;  %p665_p4 = scmp.lt.s32.totalorder %s663_s3, %s656_s20 }
  0x2a   : > { %p660_p11 = pneg %p659_p6  ;;  %p666_p10 = por %p665_p4, %p664_p9 }
  0x2c   : > { %p667_p12 = pnand %p666_p10, %p660_p11 }
  0x2e   : > { %670 = shalt.err (!%p667_p12)
}
  0x2f   : > { %573 = dma.hbm_to_vmem [thread:$0]  (!%p892_p0), %s884_s30, 128, %s888_s4, %s143_s6  }
  0x30   : > { %p1045_p1 = scmp.lt.s32.totalorder %s787_s14, 3  ;;  %p1046_p2 = scmp.ge.s32.totalorder %s787_s14, 1 }
  0x31   : > { %s937_s16 = scalar_lea.hbm %s1036_s1, %s538_s27  ;;  %s165_s18 = scalar_lea.vmem [#allocation8], %s537_s26 }
  0x32   : > { %p928_p7 = pnand %p1046_p2, %p1045_p1  ;;  %s173_s19 = sshll.u32 %s165_s18, 4  ;;  %s174_s19 = int_to_ptr.vmem [resolvable:$true] %s173_s19 }
  0x33   : > { %s162_s30 = scalar_lea.sflag [#allocation9], %s875_s25  ;;  %s671_s4 = scalar_lea.hbm %s937_s16, 128 }
  0x34   : > { %s1047_s7 = scalar_select %p928_p7, 1, 0 }
  0x35   : > { %p672_p9 = scmp.ne.s32.totalorder %s937_s16, %s671_s4  ;;  %s676_s27 = scalar_lea.hbm %s1036_s1, 256 }
  0x36   : > { %p677_p3 = scmp.lt.u32.totalorder %s937_s16, %s1036_s1  ;;  %p678_p6 = scmp.lt.u32.totalorder %s676_s27, %s671_s4 }
  0x37   : > { %p674_p11 = pnand %p672_p9, %p643_p5  ;;  %p680_p10 = scmp.lt.u32.totalorder %s671_s4, %s937_s16 }
  0x38   : > { %p679_p4 = por %p678_p6, %p677_p3 }
  0x39   : > { %p675_p13 = pneg %p674_p11 }
  0x3a   : > { %p681_p12 = por %p680_p10, %p679_p4 }
  0x3c   : > { %p682_p1 = pnand %p681_p12, %p675_p13 }
  0x3e   : > { %685 = shalt.err (!%p682_p1)
}
  0x3f   : > { %s686_s25 = scalar_lea.vmem %s174_s19, 128  ;;  %s790_s26 = smov [#allocation8]  }
  0x40   : > { %p687_p2 = scmp.ne.s32.totalorder %s174_s19, %s686_s25  ;;  %s691_s3 = sshll.u32 %s790_s26, 4  ;;  %s692_s3 = int_to_ptr.vmem [resolvable:$false] %s691_s3 }
  0x41   : > { %s693_s8 = scalar_lea.vmem %s692_s3, 256  ;;  %p694_p8 = scmp.lt.s32.totalorder %s174_s19, %s692_s3 }
  0x42   : > { %p689_p9 = pnand %p687_p2, %p643_p5  ;;  %p695_p7 = scmp.lt.s32.totalorder %s693_s8, %s686_s25 }
  0x44   : > { %p690_p11 = pneg %p689_p9  ;;  %p696_p3 = por %p695_p7, %p694_p8 }
  0x46   : > { %p697_p6 = pnand %p696_p3, %p690_p11 }
  0x48   : > { %700 = shalt.err (!%p697_p6)
}
  0x49   : > { %576 = dma.hbm_to_vmem [thread:$0]  (!%p892_p0), %s937_s16, 128, %s174_s19, %s162_s30  }
  0x4a   : > { %p1048_p13 = scmp.ne.s32.totalorder %s1047_s7, 0 }
  0x4b   : > { %s964_s15 = sand.u32 (!%p1048_p13), 1, %s771_s10   ;;  %p1049_p8 = scmp.ne.s32.totalorder (!%p1048_p13), %s1041_s21, 0 }
  0x4c   : > { %182 = sbr.rel (%p1048_p13) target bundleno = 820 (0x334), region = 28  ;;  %s967_s18 = sshll.u32 (!%p1048_p13), %s964_s15, 3 }
  0x4d   : > { %s185_s4 = scalar_lea.sflag (!%p1048_p13), [#allocation6], %s964_s15  ;;  %s188_s6 = scalar_lea.vmem (!%p1048_p13), [#allocation5], %s967_s18 }
  0x53   : > { %754 = dma.done.wait (%p1049_p8), %s185_s4, 128  }
  0x54   : > { %756 = vsyncadd (%p1049_p8), %s185_s4, 4294967168  ;;  %s194_s5 = scalar_lea.sflag [#allocation9], %s964_s15  ;;  %s197_s7 = scalar_lea.vmem [#allocation8], %s967_s18 }
  0x55   : > { %758 = dma.done.wait (%p1049_p8), %s194_s5, 128  }
  0x56   : > { %760 = vsyncadd (%p1049_p8), %s194_s5, 4294967168  ;;  %v791_v0 = vmov 0.0   ;;  %vm792_vm0 = vmmov 0   ;;  %v231_v1 = vld [vmem:[%s197_s7] sm:$0xff]  ;;  %v230_v2 = vld [vmem:[%s188_s6] sm:$0xff]  ;;  %vm303_vm1 = vcmask 64512  }
  0x57   : > { %554 = vmatprep.subr.mxu0 %v791_v0  ;;  %556 = vmatprep.mubr.msk.f32.mxu0 %vm792_vm0, %v791_v0  ;;  %v793_v6 = vmov 0   ;;  %s547_s21 = sshll.u32 %s779_s12, 7  ;;  %s222_s16 = scalar_lea.vmem [#allocation10], %s967_s18 }
  0x58   : > { %559 = vmatprep.subr.mxu1 %v791_v0  ;;  %561 = vmatprep.mubr.msk.f32.mxu1 %vm792_vm0, %v791_v0  ;;  %s426_s19 = sshll.u32 %s222_s16, 4  ;;  %s986_s27 = scalar_lea.hbm %s1037_s2, %s547_s21  ;;  %s988_s19 = int_to_ptr.vmem [resolvable:$true] %s426_s19 }
  0x59   : > { %555 = vmatpush3.xpose.msra.mxu0 %v231_v1  ;;  %560 = vmatpush3.msra.mxu1 %v231_v1  ;;  %s412_s28 = scalar_lea.sflag [#allocation7], %s964_s15  ;;  %s701_s29 = scalar_lea.vmem %s988_s19, 128 }
  0x5a   : > { %634 = vset.pattern.permute.xlu0 %v793_v6  ;;  %p702_p0 = scmp.ne.s32.totalorder %s988_s19, %s701_s29  ;;  %p1050_p5 = scmp.ne.s32.totalorder %s1042_s22, 0 }
  0x5b   : > { %s794_s12 = smov [#allocation10]  }
  0x5c   : > { %557 = vmatmul.mubr.f32.vlgmr.msra.gmra.mrb[0].mxu0 %v230_v2  ;;  %p703_p7 = pnand %p702_p0, %p1050_p5  ;;  %s705_s25 = sshll.u32 %s794_s12, 4  ;;  %s706_s25 = int_to_ptr.vmem [resolvable:$false] %s705_s25 }
  0x5d   : > { %s707_s26 = scalar_lea.vmem %s706_s25, 256  ;;  %p708_p10 = scmp.lt.s32.totalorder %s988_s19, %s706_s25 }
  0x5e   : > { %p704_p4 = pneg %p703_p7  ;;  %p709_p12 = scmp.lt.s32.totalorder %s707_s26, %s701_s29 }
  0x60   : > { %p710_p1 = por %p709_p12, %p708_p10 }
  0x62   : > { %p711_p2 = pnand %p710_p1, %p704_p4 }
 0x12f   : > { %v298_v3 = vpop.f32.mrb[0].mxu0 }
 0x130   : > { %v558_v4 = vpop.f32.mrb[1].mxu0  ;;  %v304_v5 = vsel %vm303_vm1, %v298_v3, -inf }
 0x131   : > { %305 = vmax.xlane.f32.xlu0 %v304_v5 }
 0x1be   : > { %v306_v7 = vpop.xlane.xlu0 %305 }
 0x1bf   : > { %v307_v8 = vmax.f32 %v306_v7, -1e+30 }
 0x1c1   : > { %312 = vperm.xlu0 %634, %v307_v8   ;;  %v308_v13 = vsub.f32 -1e+30, %v307_v8 }
 0x240   : > { %v313_v9 = vpop.permute.xlu0 %312 }
 0x241   : > { %v315_v10 = vsub.f32 %v298_v3, %v313_v9 }
 0x243   : > { %635 = vpow2.f32 %v315_v10 }
 0x244   : > { %637 = vpow2.f32 %v308_v13 }
 0x24d   : > { %v636_v11 = vpop.eup %635 }
 0x24e   : > { %562 = vmatmul.mubr.msk.f32.vlgmr.msra.gmra.mrb[0].mxu1 %vm303_vm1, %v636_v11  ;;  %v319_v12 = vsel %vm303_vm1, %v636_v11, 0.0  ;;  %v638_v14 = vpop.eup %637 }
 0x24f   : > { %320 = vadd.xlane.f32.xlu1 %v319_v12  ;;  %v318_v16 = vmul.f32 0.0, %v638_v14 }
 0x2dc   : > { %v321_v15 = vpop.xlane.xlu1 %320 }
 0x2dd   : > { %v322_v17 = vadd.f32 %v321_v15, %v318_v16 }
 0x2df   : > { %639 = vrcp.f32 %v322_v17 }
 0x2e9   : > { %v640_v21 = vpop.eup %639 }
 0x321   : > { %v395_v18 = vpop.f32.mrb[0].mxu1 }
 0x322   : > { %v399_v19 = vadd.f32 %v395_v18, %v318_v16  ;;  %v563_v20 = vpop.f32.mrb[1].mxu1 }
 0x324   : > { %v409_v22 = vmul.f32 %v640_v21, %v399_v19 }
 0x326   : > { %410 = vst [vmem:[%s222_s16] sm:$0xff] %v409_v22 }
 0x327   : > { %714 = shalt.err (!%p711_p2)
}
 0x328   : > { %s715_s3 = scalar_lea.hbm %s986_s27, 128  ;;  %s719_s18 = scalar_lea.hbm %s1037_s2, 256 }
 0x329   : > { %p716_p9 = scmp.ne.s32.totalorder %s986_s27, %s715_s3  ;;  %p720_p6 = scmp.lt.u32.totalorder %s986_s27, %s1037_s2 }
 0x32a   : > { %p721_p13 = scmp.lt.u32.totalorder %s719_s18, %s715_s3  ;;  %p723_p0 = scmp.lt.u32.totalorder %s715_s3, %s986_s27 }
 0x32b   : > { %p717_p11 = pnand %p716_p9, %p1050_p5 }
 0x32c   : > { %p722_p8 = por %p721_p13, %p720_p6 }
 0x32d   : > { %p718_p3 = pneg %p717_p11 }
 0x32e   : > { %p724_p7 = por %p723_p0, %p722_p8 }
 0x330   : > { %p725_p4 = pnand %p724_p7, %p718_p3 }
 0x332   : > { %728 = shalt.err (!%p725_p4)
}
 0x333   : > { %568 = dma.vmem_to_hbm [thread:$0]  (%p1050_p5), %s988_s19, 128, %s986_s27, %s412_s28  }
 0x334 PF: > { %s438_s5 = sand.u32 1, %s767_s9   ;;  %p1051_p10 = scmp.ne.s32.totalorder %s1043_s24, 0 }
 0x335   : > { %p1052_p12 = scmp.ge.s32.totalorder %s787_s14, 2  ;;  %s439_s7 = scalar_lea.sflag [#allocation7], %s438_s5 }
 0x337   : > { %p578_p1 = pnand %p1052_p12, %p1051_p10 }
 0x339   : > { %762 = dma.done.wait (!%p578_p1), %s439_s7, 128  }
 0x33a   : > { %764 = vsyncadd (!%p578_p1), %s439_s7, 4294967168  ;;  %s21_s14 = sadd.s32 1, %s787_s14   ;;  %s1053_s9 = smov %s771_s10 }
 0x33b   : > { %p18_p2 = scmp.ge.s32.totalorder %s21_s14, 4   ;;  %s1054_s10 = smov %s775_s11 }
 0x33c   : > { %s1055_s11 = smov %s866_s23  ;;  %s1056_s12 = smov %s783_s13 }
 0x33d   : > { %s1057_s13 = smov %s1059_s17  ;;  %20 = sbr.rel (!%p18_p2) target bundleno = 8 (0x8), region = 94 }
 0x344   :  { %444 = vsyncpa [#allocation6], 1 }
 0x345   :  { %446 = vsyncpa [#allocation6 + $0x1], 1 }
 0x346   :  { %447 = vsyncpa [#allocation9], 1 }
 0x347   :  { %449 = vsyncpa [#allocation9 + $0x1], 1 }
 0x348   :  { %450 = vsyncpa [#allocation7], 1 }
 0x349   :  { %452 = vsyncpa [#allocation7 + $0x1], 1 }

</bundles_post_ra>
